<compile_context>
chip_gen: v7x
topology: tpu7x:2x2x1
jax: 0.10.0
libtpu: 0.0.40
codegen_flags: <defaults>
</compile_context>

<pallas_src>
import functools

import jax
import jax.numpy as jnp
from jax.experimental import pallas as pl
from jax.experimental.pallas import tpu as pltpu


def _ln_cf_kernel(w_ref, b_ref, x_ref, o_ref, *, eps, inv_c):
    # x_ref: (Nb, C, T) tile; w_ref/b_ref: (C, 1), already f32, VMEM-resident.
    x = x_ref[...].astype(jnp.float32)
    mean = jnp.sum(x, axis=1, keepdims=True) * inv_c
    xc = x - mean
    # Two-pass variance (matches torch: ((x - u) ** 2).mean(1)).
    var = jnp.sum(xc * xc, axis=1, keepdims=True) * inv_c
    y = xc * jax.lax.rsqrt(var + eps)
    w = w_ref[...][None, :, :]          # (1, C, 1)
    b = b_ref[...][None, :, :]
    o_ref[...] = (w * y + b).astype(o_ref.dtype)


def _default_vmem_budget_bytes():
    """Generation-aware working-set budget for the double-buffered tiles."""
    cap = None
    try:
        info = pltpu.get_tpu_info()
        cap = getattr(info, "vmem_capacity_bytes", None)
    except Exception:
        cap = None
    if cap is None:
        # Unknown chip: stay v7x-safe (64 MiB/TC physical).
        return 36 * 1024 * 1024
    if cap >= 96 * 1024 * 1024:
        # v5e / v6e: 128 MiB physical -> use roughly half for the pipeline.
        return 64 * 1024 * 1024
    # v7x: 64 MiB per TensorCore -> keep working set <= ~36-40 MiB.
    return 36 * 1024 * 1024


def layer_norm_channels_first(x, weight, bias, *, eps=1e-6,
                              vmem_budget_bytes=None):
    """x: (N, C, H, W); weight/bias: (C,).  Returns (N, C, H, W)."""
    N, C, H, W = x.shape
    HW = H * W
    if vmem_budget_bytes is None:
        vmem_budget_bytes = _default_vmem_budget_bytes()

    itemsize = jnp.dtype(x.dtype).itemsize
    # sublane packing: f32 -> 8 rows/vreg, bf16 -> 16, int8/fp8 -> 32
    sublane = max(8, 32 // itemsize)
    c_pad = -(-C // sublane) * sublane

    # Only the pipelined buffers count against the budget:
    #   (in + out) x double buffer x native dtype, on the sublane-padded layout.
    # f32 temporaries live in vregs / compiler scratch, not here.
    fixed_margin = 2 * 1024 * 1024   # params + compiler scratch headroom

    def block_bytes(nb, tile):
        return nb * c_pad * tile * itemsize

    def fits(nb, tile):
        return 4 * block_bytes(nb, tile) + fixed_margin <= vmem_budget_bytes

    # --- spatial tile selection: always lane-dense (multiple of 128). ---
    hw128 = -(-HW // 128) * 128
    cap = min(hw128, 4096)
    candidates = [t for t in range(128, cap + 1, 128) if fits(1, t)]
    if not candidates:
        candidates = [128]   # pathological (huge C); vmem_limit is derived below
    # Prefer >= 512 lanes (longer DMA runs, ~85%+ of HBM roofline), minimize
    # padded traffic, tie-break by the larger tile.
    big = [t for t in candidates if t >= 512] or candidates

    def padded_total(t):
        return -(-HW // t) * t

    spatial_tile = min(big, key=lambda t: (padded_total(t), -t))
    hw_pad = padded_total(spatial_tile)
    tiles = hw_pad // spatial_tile

    # --- batch folding: only while keeping >= 8 total grid steps so each v7x
    # TensorCore gets >= 4 steps and the double buffer actually pipelines. ---
    nb = 1
    for cand in range(2, N + 1):
        if N % cand != 0:
            continue
        if fits(cand, spatial_tile) and (N // cand) * tiles >= 8:
            nb = cand

    # Derive the compiler VMEM limit from the block actually chosen.
    working = 4 * block_bytes(nb, spatial_tile) + fixed_margin
    vmem_limit = int(min(max(working + 8 * 1024 * 1024, 32 * 1024 * 1024),
                         vmem_budget_bytes + 16 * 1024 * 1024))
    vmem_limit = max(vmem_limit, working + 4 * 1024 * 1024)

    x2 = x.reshape(N, C, HW)
    if hw_pad != HW:
        # One-time pad so every block (and the output store) stays lane-dense.
        x2 = jnp.pad(x2, ((0, 0), (0, 0), (0, hw_pad - HW)))

    # Pre-cast affine params to f32 outside the kernel; constant index_map keeps
    # them VMEM-resident so the hot loop is pure x traffic.
    w2 = weight.astype(jnp.float32).reshape(C, 1)
    b2 = bias.astype(jnp.float32).reshape(C, 1)

    grid = (N // nb, tiles)
    out = pl.pallas_call(
        functools.partial(_ln_cf_kernel, eps=eps, inv_c=1.0 / C),
        out_shape=jax.ShapeDtypeStruct((N, C, hw_pad), x.dtype),
        grid_spec=pltpu.PrefetchScalarGridSpec(
            num_scalar_prefetch=0,
            grid=grid,
            in_specs=[
                pl.BlockSpec((C, 1), lambda n, t: (0, 0)),                     # weight (resident)
                pl.BlockSpec((C, 1), lambda n, t: (0, 0)),                     # bias   (resident)
                pl.BlockSpec((nb, C, spatial_tile), lambda n, t: (n, 0, t)),   # x
            ],
            out_specs=pl.BlockSpec((nb, C, spatial_tile), lambda n, t: (n, 0, t)),
        ),
        compiler_params=pltpu.CompilerParams(
            dimension_semantics=("parallel", "parallel"),
            vmem_limit_bytes=vmem_limit,
        ),
    )(w2, b2, x2)

    if hw_pad != HW:
        out = out[:, :, :HW]
    # TODO(synk): for bf16 activations with tiny C on v5e (no bf16 VALU), pack
    # more batch rows onto the sublane axis if profiling shows VALU-bound.
    return out.reshape(N, C, H, W)


def _reference(x, weight, bias, eps=1e-6):
    u = jnp.mean(x, axis=1, keepdims=True)
    s = jnp.mean((x - u) ** 2, axis=1, keepdims=True)
    xn = (x - u) / jnp.sqrt(s + eps)
    return weight[None, :, None, None] * xn + bias[None, :, None, None]


if __name__ == "__main__":
    key = jax.random.PRNGKey(0)
    kx, kw, kb, kx2, kx3 = jax.random.split(key, 5)

    # Shapes consistent with the module's channels_first forward.
    N, C, H, W = 2, 4, 16, 16
    x = jax.random.normal(kx, (N, C, H, W), dtype=jnp.float32)
    # module defaults are ones/zeros; perturb so the affine part is exercised
    weight = jnp.ones((C,), jnp.float32) + 0.1 * jax.random.normal(kw, (C,), jnp.float32)
    bias = jnp.zeros((C,), jnp.float32) + 0.1 * jax.random.normal(kb, (C,), jnp.float32)

    out = layer_norm_channels_first(x, weight, bias, eps=1e-6)
    out = jax.block_until_ready(out)
    ref = _reference(x, weight, bias, eps=1e-6)
    assert out.shape == (N, C, H, W)
    assert jnp.allclose(out, ref, atol=1e-5, rtol=1e-5)

    # Larger lane-dense tile path (HW = 1024).
    N2, C2, H2, W2 = 2, 8, 32, 32
    x_b = jax.random.normal(kx2, (N2, C2, H2, W2), dtype=jnp.float32)
    w_b = jnp.ones((C2,), jnp.float32)
    b_b = jnp.zeros((C2,), jnp.float32)
    out_b = jax.block_until_ready(layer_norm_channels_first(x_b, w_b, b_b, eps=1e-6))
    ref_b = _reference(x_b, w_b, b_b, eps=1e-6)
    assert jnp.allclose(out_b, ref_b, atol=1e-5, rtol=1e-5)

    # Non-128-aligned spatial extent exercises the pad/slice path (HW = 100).
    N3, C3, H3, W3 = 1, 6, 10, 10
    x_c = jax.random.normal(kx3, (N3, C3, H3, W3), dtype=jnp.float32)
    w_c = jnp.ones((C3,), jnp.float32)
    b_c = jnp.zeros((C3,), jnp.float32)
    out_c = jax.block_until_ready(layer_norm_channels_first(x_c, w_c, b_c, eps=1e-6))
    ref_c = _reference(x_c, w_c, b_c, eps=1e-6)
    assert jnp.allclose(out_c, ref_c, atol=1e-5, rtol=1e-5)

    print("KERNEL_OK")
</pallas_src>

<mosaic_0001>
module attributes {stable_mosaic.version = 11 : i64} {
  func.func @_ln_cf_kernel(%arg0: i32, %arg1: i32, %arg2: memref<4x1xf32, #tpu.memory_space<vmem>>, %arg3: memref<4x1xf32, #tpu.memory_space<vmem>>, %arg4: memref<1x4x256xf32, #tpu.memory_space<vmem>>, %arg5: memref<1x4x256xf32, #tpu.memory_space<vmem>>) attributes {dimension_semantics = [#tpu.dimension_semantics<parallel>, #tpu.dimension_semantics<parallel>], iteration_bounds = array<i64: 2, 1>, scalar_prefetch = 0 : i64, scratch_operands = 0 : i64, tpu.core_type = #tpu.core_type<tc>, window_params = [{pipeline_mode = #tpu.pipeline_mode<synchronous>, transform_indices = @transform_0, window_bounds = array<i64: 4, 1>}, {pipeline_mode = #tpu.pipeline_mode<synchronous>, transform_indices = @transform_1, window_bounds = array<i64: 4, 1>}, {transform_indices = @transform_2, window_bounds = array<i64: 1, 4, 256>}, {transform_indices = @transform_3, window_bounds = array<i64: 1, 4, 256>}]} {
    %c0 = arith.constant 0 : index
    %c0_0 = arith.constant 0 : index
    %c0_1 = arith.constant 0 : index
    %0 = vector.load %arg4[%c0, %c0_0, %c0_1] : memref<1x4x256xf32, #tpu.memory_space<vmem>>, vector<1x4x256xf32>
    %cst = arith.constant dense<0.000000e+00> : vector<1x256xf32>
    %1 = vector.multi_reduction <add>, %0, %cst [1] : vector<1x4x256xf32> to vector<1x256xf32>
    %2 = vector.shape_cast %1 : vector<1x256xf32> to vector<1x1x256xf32>
    %cst_2 = arith.constant 2.500000e-01 : f32
    %3 = vector.broadcast %cst_2 : f32 to vector<1x1x256xf32>
    %4 = arith.mulf %2, %3 : vector<1x1x256xf32>
    %5 = vector.broadcast %4 : vector<1x1x256xf32> to vector<1x4x256xf32>
    %6 = arith.subf %0, %5 : vector<1x4x256xf32>
    %7 = arith.mulf %6, %6 : vector<1x4x256xf32>
    %cst_3 = arith.constant dense<0.000000e+00> : vector<1x256xf32>
    %8 = vector.multi_reduction <add>, %7, %cst_3 [1] : vector<1x4x256xf32> to vector<1x256xf32>
    %9 = vector.shape_cast %8 : vector<1x256xf32> to vector<1x1x256xf32>
    %cst_4 = arith.constant 2.500000e-01 : f32
    %10 = vector.broadcast %cst_4 : f32 to vector<1x1x256xf32>
    %11 = arith.mulf %9, %10 : vector<1x1x256xf32>
    %cst_5 = arith.constant 9.99999997E-7 : f32
    %12 = vector.broadcast %cst_5 : f32 to vector<1x1x256xf32>
    %13 = arith.addf %11, %12 : vector<1x1x256xf32>
    %14 = math.rsqrt %13 : vector<1x1x256xf32>
    %15 = vector.broadcast %14 : vector<1x1x256xf32> to vector<1x4x256xf32>
    %16 = arith.mulf %6, %15 : vector<1x4x256xf32>
    %c0_6 = arith.constant 0 : index
    %c0_7 = arith.constant 0 : index
    %17 = vector.load %arg2[%c0_6, %c0_7] : memref<4x1xf32, #tpu.memory_space<vmem>>, vector<4x1xf32>
    %18 = vector.shape_cast %17 : vector<4x1xf32> to vector<1x4x1xf32>
    %c0_8 = arith.constant 0 : index
    %c0_9 = arith.constant 0 : index
    %19 = vector.load %arg3[%c0_8, %c0_9] : memref<4x1xf32, #tpu.memory_space<vmem>>, vector<4x1xf32>
    %20 = vector.shape_cast %19 : vector<4x1xf32> to vector<1x4x1xf32>
    %21 = vector.broadcast %18 : vector<1x4x1xf32> to vector<1x4x256xf32>
    %22 = arith.mulf %21, %16 : vector<1x4x256xf32>
    %23 = vector.broadcast %20 : vector<1x4x1xf32> to vector<1x4x256xf32>
    %24 = arith.addf %22, %23 : vector<1x4x256xf32>
    %c0_10 = arith.constant 0 : index
    %c0_11 = arith.constant 0 : index
    %c0_12 = arith.constant 0 : index
    %25 = vector.load %arg5[%c0_10, %c0_11, %c0_12] : memref<1x4x256xf32, #tpu.memory_space<vmem>>, vector<1x4x256xf32>
    tpu.vector_store %arg5[%c0_10, %c0_11, %c0_12], %24 {strides = array<i32>} : memref<1x4x256xf32, #tpu.memory_space<vmem>>, vector<1x4x256xf32>,
    return
  }
  func.func @transform_0(%arg0: i32, %arg1: i32) -> (i32, i32) {
    %c0_i32 = arith.constant 0 : i32
    %c0_i32_0 = arith.constant 0 : i32
    %c0_i32_1 = arith.constant 0 : i32
    return %c0_i32, %c0_i32_0 : i32, i32
  }
  func.func @transform_1(%arg0: i32, %arg1: i32) -> (i32, i32) {
    %c0_i32 = arith.constant 0 : i32
    %c0_i32_0 = arith.constant 0 : i32
    %c0_i32_1 = arith.constant 0 : i32
    return %c0_i32, %c0_i32_0 : i32, i32
  }
  func.func @transform_2(%arg0: i32, %arg1: i32) -> (i32, i32, i32) {
    %c0_i32 = arith.constant 0 : i32
    %c0_i32_0 = arith.constant 0 : i32
    return %arg0, %c0_i32, %arg1 : i32, i32, i32
  }
  func.func @transform_3(%arg0: i32, %arg1: i32) -> (i32, i32, i32) {
    %c0_i32 = arith.constant 0 : i32
    %c0_i32_0 = arith.constant 0 : i32
    return %arg0, %c0_i32, %arg1 : i32, i32, i32
  }
}

</mosaic_0001>

<bundles_post_ra>
// kernel: tpu_custom_call.1
= control target key start
LH: loop header
LB: loop body
LE: loop exit
PB: predicated region body
PF: predicated region fallthrough
CT: control target
= control target key end

     0   :  { %8 = vsyncpa [#allocation3], 0  ;;  %s673_s0 = inlined_call_operand.vmem [shape: f32[4,1], index: 0, kind: input, shape index: {}]   ;;  %s674_s1 = inlined_call_operand.vmem [shape: f32[4,1], index: 1, kind: input, shape index: {}]   ;;  %s675_s2 = inlined_call_operand.vmem [shape: f32[2,4,256], index: 2, kind: input, shape index: {}]   ;;  %s676_s3 = inlined_call_operand.hbm [shape: f32[2,4,256], index: 3, kind: output, shape index: {}]  }
   0x1   :  { %10 = vsyncpa [#allocation3 + $0x1], 0  ;;  %s551_s12 = smov 0   ;;  %s553_s13 = smov 0  }
   0x2   :  { %s555_s14 = smov 0   ;;  %s557_s15 = smov 0  }
   0x3   :  { %s559_s16 = smov 0   ;;  %s561_s17 = smov 0  }
   0x4 LB: > { %s372_s18 = sadd.s32 4294967295, %s527_s17   ;;  %s373_s19 = sadd.s32 4294967294, %s527_s17   ;;  %s527_s17 = sphi %s561_s17, %s16_s17   ;;  %s523_s16 = sphi %s559_s16, %s683_s16   ;;  %s519_s15 = sphi %s557_s15, %s682_s15   ;;  %s515_s14 = sphi %s555_s14, %s681_s14   ;;  %s511_s13 = sphi %s553_s13, %s680_s13   ;;  %s507_s12 = sphi %s551_s12, %s679_s12  }
   0x5   : > { %s28_s20 = sadd.s32 1, %s523_s16  ;;  %s107_s21 = sadd.s32 1, %s515_s14 }
   0x6   : > { %p30_p0 = scmp.ge.s32.totalorder %s28_s20, 2  ;;  %p117_p1 = scmp.ne.s32.totalorder %s515_s14, %s511_s13 }
   0x7   : > { %p118_p2 = scmp.eq.s32.totalorder %s372_s18, 1  ;;  %p123_p3 = scmp.ne.s32.totalorder %s511_s13, %s507_s12 }
   0x8   : > { %s685_s20 = smov (%p30_p0, %s28_s20), 0  ;;  %p124_p5 = scmp.eq.s32.totalorder %s373_s19, 1 }
   0x9   : > { %p591_p4 = por %p118_p2, %p117_p1  ;;  %s102_s23 = ssub.s32 %s523_s16, %s685_s20 }
   0xa   : > { %p376_p6 = scmp.ge.s32.totalorder %s527_s17, 1  ;;  %p105_p7 = scmp.eq.s32.totalorder %s102_s23, 0 }
   0xb   : > { %p598_p8 = por %p124_p5, %p123_p3  ;;  %p161_p9 = scmp.lt.s32.totalorder %s527_s17, 3 }
   0xc   : > { %s604_s25 = scalar_select %p105_p7, %s515_s14, %s107_s21  }
   0xd   : > { %p162_p10 = pnand %p376_p6, %p161_p9 }
   0xe   : > { %v255_v0 = vld [vmem:[%s673_s0] sm:$0xf] (!%p162_p10)  ;;  %v529_v1 = vmov (!%p162_p10), 0   ;;  %p190_p11 = scmp.lt.s32.totalorder (!%p162_p10), %s519_s15, 1  ;;  %vm204_vm0 = vcmask (!%p162_p10), 1043456   ;;  %s186_s8 = sand.u32 (!%p162_p10), 1, %s511_s13  }
   0xf   : > { %165 = sbr.rel (%p162_p10) target bundleno = 166 (0xa6), region = 32  ;;  %443 = vset.pattern.permute.xlu0 (!%p162_p10), %v529_v1  ;;  %v256_v2 = vld [vmem:[%s674_s1] sm:$0xf] (!%p162_p10)  ;;  %s377_s9 = sshll.u32 (!%p162_p10), %s186_s8, 3 }
  0x10   : > { %259 = vperm.xlu0 (!%p162_p10), %443, %v255_v0   ;;  %s386_s10 = sshll.u32 (!%p162_p10), %s519_s15, 7  ;;  %s188_s11 = scalar_lea.vmem (!%p162_p10), [#allocation2], %s377_s9 }
  0x11   : > { %s296_s18 = sshll.u32 (!%p162_p10), %s188_s11, 4  ;;  %s626_s23 = scalar_lea.hbm (!%p162_p10), %s676_s3, %s386_s10  ;;  %s628_s18 = int_to_ptr.vmem [resolvable:$true] %s296_s18 }
  0x12   : > { %s280_s26 = scalar_lea.sflag (!%p162_p10), [#allocation3], %s186_s8  ;;  %s449_s27 = scalar_lea.vmem (!%p162_p10), %s628_s18, 128 }
  0x13   : > { %p450_p12 = scmp.ne.s32.totalorder (!%p162_p10), %s628_s18, %s449_s27 }
  0x14   : > { %269 = vperm.xlu0 (!%p162_p10), %443, %v256_v2  }
  0x15   : > { %p451_p13 = pnand (!%p162_p10), %p450_p12, %p591_p4 }
  0x16   : > { %s191_s30 = scalar_select %p190_p11, %s519_s15, 1 }
  0x17   : > { %p452_p0 = pneg %p451_p13  ;;  %s530_s15 = smov [#allocation2]  }
  0x18   : > { %s385_s4 = sshll.u32 %s191_s30, 3  ;;  %s453_s28 = sshll.u32 %s530_s15, 4  ;;  %s454_s28 = int_to_ptr.vmem [resolvable:$false] %s453_s28 }
  0x19   : > { %s197_s7 = scalar_lea.vmem %s675_s2, %s385_s4  ;;  %s455_s29 = scalar_lea.vmem %s454_s28, 256 }
  0x1a   : > { %v200_v3 = vld [vmem:[%s197_s7] sm:$0xff]  ;;  %p456_p1 = scmp.lt.s32.totalorder %s628_s18, %s454_s28  ;;  %p457_p2 = scmp.lt.s32.totalorder %s455_s29, %s449_s27 }
  0x1b   : > { %v202_v4 = vcombine.high %v200_v3, %v200_v3  ;;  %v205_v5 = vsel %vm204_vm0, %v200_v3, 0.0 }
  0x1c   : > { %v206_v7 = vrot.slane %v205_v5, 4  ;;  %p458_p3 = por %p457_p2, %p456_p1 }
  0x1d   : > { %v212_v6 = vsel %vm204_vm0, %v202_v4, 0.0 }
  0x1e   : > { %v213_v8 = vrot.slane %v212_v6, 4  ;;  %v207_v9 = vadd.f32 %v206_v7, %v205_v5  ;;  %p459_p5 = pnand %p458_p3, %p452_p0 }
  0x20   : > { %v214_v10 = vadd.f32 %v213_v8, %v212_v6  ;;  %v208_v11 = vrot.slane %v207_v9, 2 }
  0x22   : > { %v215_v12 = vrot.slane %v214_v10, 2  ;;  %v209_v13 = vadd.f32 %v208_v11, %v207_v9 }
  0x24   : > { %v216_v14 = vadd.f32 %v215_v12, %v214_v10  ;;  %v210_v15 = vrot.slane %v209_v13, 1 }
  0x26   : > { %v217_v16 = vrot.slane %v216_v14, 1  ;;  %v211_v17 = vadd.f32 %v210_v15, %v209_v13 }
  0x28   : > { %v218_v18 = vadd.f32 %v217_v16, %v216_v14  ;;  %v219_v19 = vmul.f32 0.25, %v211_v17 }
  0x2a   : > { %v220_v20 = vmul.f32 0.25, %v218_v18 }
  0x2c   : > { %v223_v21 = vcombine.low %v219_v19, %v220_v20 }
  0x2e   : > { %v225_v22 = vsub.f32 %v200_v3, %v223_v21 }
  0x30   : > { %v226_v23 = vmul.f32 %v225_v22, %v225_v22 }
  0x32   : > { %v228_v24 = vcombine.high %v226_v23, %v226_v23  ;;  %v230_v25 = vsel %vm204_vm0, %v226_v23, 0.0 }
  0x33   : > { %v231_v27 = vrot.slane %v230_v25, 4 }
  0x34   : > { %v237_v26 = vsel %vm204_vm0, %v228_v24, 0.0 }
  0x35   : > { %v238_v28 = vrot.slane %v237_v26, 4  ;;  %v232_v29 = vadd.f32 %v231_v27, %v230_v25 }
  0x37   : > { %v239_v30 = vadd.f32 %v238_v28, %v237_v26  ;;  %v233_v31 = vrot.slane %v232_v29, 2 }
  0x39   : > { %v240_v32 = vrot.slane %v239_v30, 2  ;;  %v234_v33 = vadd.f32 %v233_v31, %v232_v29 }
  0x3b   : > { %v241_v34 = vadd.f32 %v240_v32, %v239_v30  ;;  %v235_v35 = vrot.slane %v234_v33, 1 }
  0x3d   : > { %v242_v36 = vrot.slane %v241_v34, 1  ;;  %v236_v37 = vadd.f32 %v235_v35, %v234_v33 }
  0x3f   : > { %v243_v38 = vadd.f32 %v242_v36, %v241_v34  ;;  %v244_v39 = vmul.f32 0.25, %v236_v37 }
  0x41   : > { %v245_v40 = vmul.f32 0.25, %v243_v38  ;;  %v246_v41 = vadd.f32 1e-06, %v244_v39 }
  0x43   : > { %v247_v42 = vadd.f32 1e-06, %v245_v40  ;;  %445 = vrsqrt.f32 %v246_v41 }
  0x45   : > { %447 = vrsqrt.f32 %v247_v42 }
  0x4d   : > { %v446_v43 = vpop.eup %445 }
  0x4f   : > { %v448_v44 = vpop.eup %447 }
  0x50   : > { %v252_v45 = vcombine.low %v446_v43, %v448_v44 }
  0x52   : > { %v254_v46 = vmul.f32 %v252_v45, %v225_v22 }
  0x54   : > { %v263_v47 = vcombine.high %v254_v46, %v254_v46 }
  0x8f   : > { %v260_v48 = vpop.permute.xlu0 %259 }
  0x90   : > { %v265_v49 = vmul.f32 %v260_v48, %v254_v46  ;;  %v266_v50 = vmul.f32 %v263_v47, %v260_v48 }
  0x93   : > { %v270_v51 = vpop.permute.xlu0 %269 }
  0x94   : > { %v272_v52 = vadd.f32 %v270_v51, %v265_v49  ;;  %v273_v53 = vadd.f32 %v270_v51, %v266_v50 }
  0x96   : > { %v276_v54 = vcombine.low %v272_v52, %v273_v53 }
  0x98   : > { %278 = vst [vmem:[%s188_s11] sm:$0xff] %v276_v54 }
  0x99   : > { %462 = shalt.err (!%p459_p5)
}
  0x9a   : > { %s463_s30 = scalar_lea.hbm %s626_s23, 128  ;;  %s467_s6 = scalar_lea.hbm %s676_s3, 256 }
  0x9b   : > { %p464_p6 = scmp.ne.s32.totalorder %s626_s23, %s463_s30  ;;  %p468_p10 = scmp.lt.u32.totalorder %s626_s23, %s676_s3 }
  0x9c   : > { %p469_p11 = scmp.lt.u32.totalorder %s467_s6, %s463_s30  ;;  %p471_p13 = scmp.lt.u32.totalorder %s463_s30, %s626_s23 }
  0x9d   : > { %p465_p7 = pnand %p464_p6, %p591_p4 }
  0x9e   : > { %p470_p12 = por %p469_p11, %p468_p10 }
  0x9f   : > { %p466_p9 = pneg %p465_p7 }
  0xa0   : > { %p472_p0 = por %p471_p13, %p470_p12 }
  0xa2   : > { %p473_p1 = pnand %p472_p0, %p466_p9 }
  0xa4   : > { %476 = shalt.err (!%p473_p1)
}
  0xa5   : > { %387 = dma.vmem_to_hbm [thread:$0]  (%p591_p4), %s628_s18, 128, %s626_s23, %s280_s26  }
  0xa6 PF: > { %p393_p2 = scmp.ge.s32.totalorder %s527_s17, 2  ;;  %s308_s9 = sand.u32 1, %s507_s12  }
  0xa7   : > { %s309_s10 = scalar_lea.sflag [#allocation3], %s308_s9 }
  0xa8   : > { %p390_p3 = pnand %p393_p2, %p598_p8 }
  0xaa   : > { %502 = dma.done.wait (!%p390_p3), %s309_s10, 128  }
  0xab   : > { %504 = vsyncadd (!%p390_p3), %s309_s10, 4294967168  ;;  %s16_s17 = sadd.s32 1, %s527_s17   ;;  %s679_s12 = smov %s511_s13 }
  0xac   : > { %p13_p5 = scmp.ge.s32.totalorder %s16_s17, 4   ;;  %s680_s13 = smov %s515_s14 }
  0xad   : > { %s681_s14 = smov %s604_s25  ;;  %s682_s15 = smov %s523_s16 }
  0xae   : > { %s683_s16 = smov %s685_s20  ;;  %15 = sbr.rel (!%p13_p5) target bundleno = 4 (0x4), region = 67 }
  0xb5   :  { %314 = vsyncpa [#allocation3], 1 }
  0xb6   :  { %316 = vsyncpa [#allocation3 + $0x1], 1 }

</bundles_post_ra>
